<compile_context>
chip_gen: v7x
topology: tpu7x:2x2x1
jax: 0.10.0
libtpu: 0.0.40
codegen_flags: <defaults>
</compile_context>

<pallas_src>
import functools

import jax
import jax.numpy as jnp
from jax.experimental import pallas as pl
from jax.experimental.pallas import tpu as pltpu

NUM_LAYERS = 20   # 20 Linear layers per branch (from the module's __init__)
PATH_NUM = 2
LANE = 128        # TPU vreg lane width
SUBLANE = 8       # TPU vreg sublane count (f32)


def _round_up(a, m):
    return ((a + m - 1) // m) * m


def _num_tensorcores():
    """Best-effort TensorCores-per-chip detection (2 on v7x, else 1)."""
    try:
        dev = jax.devices()[0]
    except Exception:
        return 1
    for attr in ("num_cores", "core_count", "num_cores_per_chip"):
        v = getattr(dev, attr, None)
        if isinstance(v, int) and 1 <= v <= 8:
            return v
    kind = str(getattr(dev, "device_kind", "")).lower()
    if "v7" in kind or "7x" in kind:
        return 2
    return 1


def _branch_chain_kernel(x_ref, w_ref, b_ref, o_ref, *, num_layers):
    """Apply `num_layers` chained Linear layers to one batch tile.

    x_ref: (tm, F)      input tile (F already lane-padded by the wrapper)
    w_ref: (L, F, F)    per-layer weights, pre-transposed to (in, out)
    b_ref: (L, 1, F)    per-layer biases
    o_ref: (tm, F)      output tile
    """
    h = x_ref[...].astype(jnp.float32)
    # Statically unrolled chain of MXU matmuls + VPU bias adds, all in VMEM.
    # With layer fusion enabled, num_layers == 1 (single affine map).
    for l in range(num_layers):
        h = jnp.dot(h, w_ref[l], preferred_element_type=jnp.float32) + b_ref[l]
    o_ref[...] = h.astype(o_ref.dtype)


def branch_chain(x, w_t, b, *, num_tiles=1):
    """Run the Linear chain of one branch on x.

    x   : (N, F) float32, N divisible by num_tiles, per-tile rows multiple of 8
    w_t : (L, F, F) float32, layer l weight already transposed to (in, out)
    b   : (L, 1, F) float32
    """
    n, f = x.shape
    num_layers = w_t.shape[0]
    assert n % num_tiles == 0, "batch must be divisible by the number of tiles"
    tm = n // num_tiles

    kernel = functools.partial(_branch_chain_kernel, num_layers=num_layers)

    cost = pl.CostEstimate(
        flops=2 * n * f * f * num_layers,
        transcendentals=0,
        bytes_accessed=4 * (x.size + w_t.size + b.size + n * f),
    )

    return pl.pallas_call(
        kernel,
        out_shape=jax.ShapeDtypeStruct((n, f), x.dtype),
        grid_spec=pltpu.PrefetchScalarGridSpec(
            num_scalar_prefetch=0,
            grid=(num_tiles,),
            in_specs=[
                pl.BlockSpec((tm, f), lambda i: (i, 0)),
                # Weights/biases: same block for every grid step -> DMA'd once.
                pl.BlockSpec((num_layers, f, f), lambda i: (0, 0, 0)),
                pl.BlockSpec((num_layers, 1, f), lambda i: (0, 0, 0)),
            ],
            out_specs=pl.BlockSpec((tm, f), lambda i: (i, 0)),
        ),
        compiler_params=pltpu.CompilerParams(
            dimension_semantics=("parallel",),
        ),
        cost_estimate=cost,
    )(x, w_t, b)


def init_params(key, in_features):
    """Deterministic init of both branches' 20 Linear layers.

    Mirrors PyTorch nn.Linear default init: U(-1/sqrt(fan_in), 1/sqrt(fan_in)).
    weights: (path_num, L, out_features, in_features)   (PyTorch layout)
    biases : (path_num, L, out_features)
    """
    bound = 1.0 / jnp.sqrt(jnp.float32(in_features))
    kw, kb = jax.random.split(key)
    weights = jax.random.uniform(
        kw, (PATH_NUM, NUM_LAYERS, in_features, in_features),
        minval=-bound, maxval=bound, dtype=jnp.float32)
    biases = jax.random.uniform(
        kb, (PATH_NUM, NUM_LAYERS, in_features),
        minval=-bound, maxval=bound, dtype=jnp.float32)
    return weights, biases


def prepare_branch_params(weights, biases, branch_id, *,
                          fuse_layers=True, pad_to_lanes=True):
    """One-time parameter prep (hoisted out of the per-call forward).

    - selects the routed branch,
    - transposes weights to (in, out) once,
    - optionally folds the 20 bias-only Linear layers into a single affine map,
    - optionally zero-pads the feature dim up to a multiple of 128 lanes.
    """
    w = weights[branch_id]                 # (L, out, in)  PyTorch layout
    b = biases[branch_id]                  # (L, out)
    f = int(w.shape[-1])
    w_t = jnp.transpose(w, (0, 2, 1))      # (L, in, out)

    if fuse_layers:
        # y = (((x W1^T + b1) W2^T + b2) ... ) = x @ W_tot + b_tot
        w_tot = w_t[0]
        b_tot = b[0]
        for l in range(1, NUM_LAYERS):
            w_tot = jnp.dot(w_tot, w_t[l], preferred_element_type=jnp.float32)
            b_tot = jnp.dot(b_tot, w_t[l], preferred_element_type=jnp.float32) + b[l]
        w_t = w_tot[None]                  # (1, F, F)
        b_use = b_tot[None]                # (1, F)
    else:
        b_use = b                          # (L, F)

    f_pad = f
    if pad_to_lanes and f % LANE != 0:
        f_pad = _round_up(f, LANE)
        w_t = jnp.pad(w_t, ((0, 0), (0, f_pad - f), (0, f_pad - f)))
        b_use = jnp.pad(b_use, ((0, 0), (0, f_pad - f)))

    return w_t, b_use[:, None, :], f, f_pad


def miss_model_forward(x, prepped, *, num_tiles=1):
    """Forward pass of MissModel: pad -> Pallas branch chain -> slice."""
    w_t, b2, f_orig, f_pad = prepped
    n, f = x.shape
    assert f == f_orig, "feature dim mismatch with prepared params"

    row_mult = SUBLANE * num_tiles
    n_pad = _round_up(n, row_mult)

    xp = x
    if n_pad != n or f_pad != f:
        xp = jnp.pad(x, ((0, n_pad - n), (0, f_pad - f)))

    out = branch_chain(xp, w_t, b2, num_tiles=num_tiles)

    if n_pad != n or f_pad != f:
        out = out[:n, :f]
    return out


def make_miss_model(weights, biases, *, is_hit=False, fuse_layers=True,
                    pad_to_lanes=True, num_tiles=None):
    """Build a jitted forward closure with one-time parameter prep."""
    # MissHitScatter: is_hit=True -> all rows to path 0; else all rows to path 1.
    # Static all-or-nothing routing -> compile-time branch selection (glue).
    branch_id = 0 if is_hit else 1
    prepped = prepare_branch_params(
        weights, biases, branch_id,
        fuse_layers=fuse_layers, pad_to_lanes=pad_to_lanes)
    if num_tiles is None:
        num_tiles = _num_tensorcores()
    fwd = functools.partial(miss_model_forward, prepped=prepped,
                            num_tiles=num_tiles)
    return jax.jit(fwd)


def _reference_forward(x, weights, biases, *, is_hit=False):
    """Plain-JAX reference (literal 20-layer chain) for correctness checking."""
    branch_id = 0 if is_hit else 1
    h = x
    for l in range(NUM_LAYERS):
        h = h @ weights[branch_id, l].T + biases[branch_id, l]
    return h


if __name__ == "__main__":
    # Small shapes consistent with the module's forward: x is (batch, in_features).
    batch = 128
    in_features = 32

    key = jax.random.PRNGKey(0)
    k_x, k_p = jax.random.split(key)
    x = jax.random.normal(k_x, (batch, in_features), dtype=jnp.float32)
    weights, biases = init_params(k_p, in_features)

    ref = _reference_forward(x, weights, biases, is_hit=False)

    # Default (fast) path: fused affine map, lane-padded, one tile per TC.
    fwd = make_miss_model(weights, biases, is_hit=False)
    out = jax.block_until_ready(fwd(x))
    assert out.shape == (batch, in_features)
    assert jnp.allclose(out, ref, atol=1e-4, rtol=1e-4), float(
        jnp.max(jnp.abs(out - ref)))

    # Also validate the literal in-kernel 20-layer chain (same kernel, L=20,
    # all weights resident in VMEM).
    fwd_chain = make_miss_model(weights, biases, is_hit=False,
                                fuse_layers=False)
    out2 = jax.block_until_ready(fwd_chain(x))
    assert jnp.allclose(out2, ref, atol=1e-4, rtol=1e-4), float(
        jnp.max(jnp.abs(out2 - ref)))

    print("KERNEL_OK")
</pallas_src>

<mosaic_0001>
module attributes {stable_mosaic.version = 11 : i64} {
  func.func @_branch_chain_kernel(%arg0: i32, %arg1: memref<128x128xf32, #tpu.memory_space<vmem>>, %arg2: memref<1x128x128xf32, #tpu.memory_space<vmem>>, %arg3: memref<1x1x128xf32, #tpu.memory_space<vmem>>, %arg4: memref<128x128xf32, #tpu.memory_space<vmem>>) attributes {dimension_semantics = [#tpu.dimension_semantics<parallel>], iteration_bounds = array<i64: 1>, scalar_prefetch = 0 : i64, scratch_operands = 0 : i64, tpu.core_type = #tpu.core_type<tc>, window_params = [{transform_indices = @transform_0, window_bounds = array<i64: 128, 128>}, {pipeline_mode = #tpu.pipeline_mode<synchronous>, transform_indices = @transform_1, window_bounds = array<i64: 1, 128, 128>}, {pipeline_mode = #tpu.pipeline_mode<synchronous>, transform_indices = @transform_2, window_bounds = array<i64: 1, 1, 128>}, {transform_indices = @transform_3, window_bounds = array<i64: 128, 128>}]} {
    %c0 = arith.constant 0 : index
    %c0_0 = arith.constant 0 : index
    %0 = vector.load %arg1[%c0, %c0_0] : memref<128x128xf32, #tpu.memory_space<vmem>>, vector<128x128xf32>
    %c0_1 = arith.constant 0 : index
    %c0_2 = arith.constant 0 : index
    %c0_3 = arith.constant 0 : index
    %1 = vector.load %arg2[%c0_1, %c0_2, %c0_3] : memref<1x128x128xf32, #tpu.memory_space<vmem>>, vector<1x128x128xf32>
    %2 = vector.shape_cast %1 : vector<1x128x128xf32> to vector<128x128xf32>
    %cst = arith.constant dense<0.000000e+00> : vector<128x128xf32>
    %3 = tpu.matmul %0, %2, %cst {dimension_numbers = #tpu.dot_dimension_numbers<[1], [0], [0], [1], [0, 0, 1, 1], [], []>} : vector<128x128xf32>, vector<128x128xf32>, vector<128x128xf32> -> vector<128x128xf32>
    %c0_4 = arith.constant 0 : index
    %c0_5 = arith.constant 0 : index
    %c0_6 = arith.constant 0 : index
    %4 = vector.load %arg3[%c0_4, %c0_5, %c0_6] : memref<1x1x128xf32, #tpu.memory_space<vmem>>, vector<1x1x128xf32>
    %5 = vector.shape_cast %4 : vector<1x1x128xf32> to vector<1x128xf32>
    %6 = vector.broadcast %5 : vector<1x128xf32> to vector<128x128xf32>
    %7 = arith.addf %3, %6 : vector<128x128xf32>
    %c0_7 = arith.constant 0 : index
    %c0_8 = arith.constant 0 : index
    %8 = vector.load %arg4[%c0_7, %c0_8] : memref<128x128xf32, #tpu.memory_space<vmem>>, vector<128x128xf32>
    tpu.vector_store %arg4[%c0_7, %c0_8], %7 {strides = array<i32>} : memref<128x128xf32, #tpu.memory_space<vmem>>, vector<128x128xf32>,
    return
  }
  func.func @transform_0(%arg0: i32) -> (i32, i32) {
    %c0_i32 = arith.constant 0 : i32
    %c0_i32_0 = arith.constant 0 : i32
    return %arg0, %c0_i32 : i32, i32
  }
  func.func @transform_1(%arg0: i32) -> (i32, i32, i32) {
    %c0_i32 = arith.constant 0 : i32
    %c0_i32_0 = arith.constant 0 : i32
    %c0_i32_1 = arith.constant 0 : i32
    %c0_i32_2 = arith.constant 0 : i32
    return %c0_i32, %c0_i32_0, %c0_i32_1 : i32, i32, i32
  }
  func.func @transform_2(%arg0: i32) -> (i32, i32, i32) {
    %c0_i32 = arith.constant 0 : i32
    %c0_i32_0 = arith.constant 0 : i32
    %c0_i32_1 = arith.constant 0 : i32
    %c0_i32_2 = arith.constant 0 : i32
    return %c0_i32, %c0_i32_0, %c0_i32_1 : i32, i32, i32
  }
  func.func @transform_3(%arg0: i32) -> (i32, i32) {
    %c0_i32 = arith.constant 0 : i32
    %c0_i32_0 = arith.constant 0 : i32
    return %arg0, %c0_i32 : i32, i32
  }
}

</mosaic_0001>

<bundles_post_ra>
// kernel: miss_model_forward.1
= control target key start
LH: loop header
LB: loop body
LE: loop exit
PB: predicated region body
PF: predicated region fallthrough
CT: control target
= control target key end

     0   :  { %s522_s1 = inlined_call_operand.vmem [shape: f32[1,128,128], index: 1, kind: input, shape index: {}]   ;;  %s523_s0 = inlined_call_operand.vmem [shape: f32[128,128], index: 0, kind: input, shape index: {}]   ;;  %s524_s2 = inlined_call_operand.vmem [shape: f32[1,1,128], index: 2, kind: input, shape index: {}]   ;;  %s525_s3 = inlined_call_operand.vmem [shape: f32[128,128], index: 3, kind: output, shape index: {}]  }
   0x1   :  { %v30_v0 = vld [vmem:[%s522_s1] sm:$0xff]  ;;  %v31_v1 = vld [vmem:[%s522_s1 + $0x8] sm:$0xff]  ;;  %v32_v2 = vld [vmem:[%s522_s1 + $0x10] sm:$0xff] }
   0x2   :  { %v307_v3 = vpack.c.bf16 %v31_v1, %v30_v0  ;;  %v33_v4 = vld [vmem:[%s522_s1 + $0x18] sm:$0xff]  ;;  %v34_v6 = vld [vmem:[%s522_s1 + $0x20] sm:$0xff]  ;;  %v35_v7 = vld [vmem:[%s522_s1 + $0x28] sm:$0xff] }
   0x3   :  { %v311_v5 = vpack.c.bf16 %v33_v4, %v32_v2  ;;  %v315_v8 = vpack.c.bf16 %v35_v7, %v34_v6  ;;  %v14_v9 = vld [vmem:[%s523_s0] sm:$0xff]  ;;  %v36_v11 = vld [vmem:[%s522_s1 + $0x30] sm:$0xff]  ;;  %v37_v12 = vld [vmem:[%s522_s1 + $0x38] sm:$0xff] }
   0x4   :  { %308 = vmatprep.subr.bf16.mxu0 %v307_v3  ;;  %339 = vmatprep.subr.bf16.mxu1 %v307_v3  ;;  %v22_v10 = vld [vmem:[%s523_s0 + $0x40] sm:$0xff]  ;;  %v319_v13 = vpack.c.bf16 %v37_v12, %v36_v11  ;;  %v39_v15 = vld [vmem:[%s522_s1 + $0x48] sm:$0xff]  ;;  %v40_v17 = vld [vmem:[%s522_s1 + $0x50] sm:$0xff] }
   0x5   :  { %310 = vmatpush3.bf16.msra.mxu0 %v307_v3  ;;  %347 = vmatpush3.bf16.msra.mxu1 %v307_v3  ;;  %v38_v14 = vld [vmem:[%s522_s1 + $0x40] sm:$0xff]  ;;  %v41_v18 = vld [vmem:[%s522_s1 + $0x58] sm:$0xff]  ;;  %v43_v21 = vld [vmem:[%s522_s1 + $0x68] sm:$0xff] }
   0x6   :  { %312 = vmatprep.subr.bf16.mxu0 %v311_v5  ;;  %340 = vmatprep.subr.bf16.mxu1 %v311_v5  ;;  %v323_v16 = vpack.c.bf16 %v39_v15, %v38_v14  ;;  %v327_v19 = vpack.c.bf16 %v41_v18, %v40_v17  ;;  %v42_v20 = vld [vmem:[%s522_s1 + $0x60] sm:$0xff]  ;;  %v44_v23 = vld [vmem:[%s522_s1 + $0x70] sm:$0xff]  ;;  %v45_v24 = vld [vmem:[%s522_s1 + $0x78] sm:$0xff] }
   0x7   :  { %283 = vmatprep.mubr.f32.mxu0 %v14_v9  ;;  %295 = vmatprep.mubr.f32.mxu1 %v22_v10  ;;  %v331_v22 = vpack.c.bf16 %v43_v21, %v42_v20  ;;  %v335_v25 = vpack.c.bf16 %v45_v24, %v44_v23  ;;  %v15_v26 = vld [vmem:[%s523_s0 + $0x8] sm:$0xff]  ;;  %v16_v28 = vld [vmem:[%s523_s0 + $0x10] sm:$0xff]  ;;  %v17_v30 = vld [vmem:[%s523_s0 + $0x18] sm:$0xff] }
   0x8   :  { %v23_v27 = vld [vmem:[%s523_s0 + $0x48] sm:$0xff]  ;;  %v24_v29 = vld [vmem:[%s523_s0 + $0x50] sm:$0xff]  ;;  %v25_v31 = vld [vmem:[%s523_s0 + $0x58] sm:$0xff] }
   0x9   :  { %314 = vmatpush3.bf16.msra.mxu0 %v311_v5  ;;  %348 = vmatpush3.bf16.msra.mxu1 %v311_v5  ;;  %v18_v32 = vld [vmem:[%s523_s0 + $0x20] sm:$0xff]  ;;  %v19_v34 = vld [vmem:[%s523_s0 + $0x28] sm:$0xff]  ;;  %v20_v36 = vld [vmem:[%s523_s0 + $0x30] sm:$0xff] }
   0xa   :  { %316 = vmatprep.subr.bf16.mxu0 %v315_v8  ;;  %341 = vmatprep.subr.bf16.mxu1 %v315_v8  ;;  %v26_v33 = vld [vmem:[%s523_s0 + $0x60] sm:$0xff]  ;;  %v27_v35 = vld [vmem:[%s523_s0 + $0x68] sm:$0xff]  ;;  %v28_v37 = vld [vmem:[%s523_s0 + $0x70] sm:$0xff] }
   0xb   :  { %v21_v38 = vld [vmem:[%s523_s0 + $0x38] sm:$0xff]  ;;  %v218_v40 = vld [vmem:[%s524_s2] ss:$0 sm:$0xff] }
   0xc   :  { %v29_v39 = vld [vmem:[%s523_s0 + $0x78] sm:$0xff] }
   0xd   :  { %318 = vmatpush3.bf16.msra.mxu0 %v315_v8  ;;  %349 = vmatpush3.bf16.msra.mxu1 %v315_v8 }
   0xe   :  { %320 = vmatprep.subr.bf16.mxu0 %v319_v13  ;;  %342 = vmatprep.subr.bf16.mxu1 %v319_v13 }
  0x11   :  { %322 = vmatpush3.bf16.msra.mxu0 %v319_v13  ;;  %350 = vmatpush3.bf16.msra.mxu1 %v319_v13 }
  0x12   :  { %324 = vmatprep.subr.bf16.mxu0 %v323_v16  ;;  %343 = vmatprep.subr.bf16.mxu1 %v323_v16 }
  0x15   :  { %326 = vmatpush3.bf16.msra.mxu0 %v323_v16  ;;  %351 = vmatpush3.bf16.msra.mxu1 %v323_v16 }
  0x16   :  { %328 = vmatprep.subr.bf16.mxu0 %v327_v19  ;;  %344 = vmatprep.subr.bf16.mxu1 %v327_v19 }
  0x19   :  { %330 = vmatpush3.bf16.msra.mxu0 %v327_v19  ;;  %352 = vmatpush3.bf16.msra.mxu1 %v327_v19 }
  0x1a   :  { %332 = vmatprep.subr.bf16.mxu0 %v331_v22  ;;  %345 = vmatprep.subr.bf16.mxu1 %v331_v22 }
  0x1d   :  { %334 = vmatpush3.bf16.msra.mxu0 %v331_v22  ;;  %353 = vmatpush3.bf16.msra.mxu1 %v331_v22 }
  0x1e   :  { %336 = vmatprep.subr.bf16.mxu0 %v335_v25  ;;  %346 = vmatprep.subr.bf16.mxu1 %v335_v25 }
  0x21   :  { %338 = vmatpush3.bf16.msra.mxu0 %v335_v25  ;;  %354 = vmatpush3.bf16.msra.mxu1 %v335_v25 }
  0x24   :  { %284 = vmatmul.mubr.f32.vlgmr.msra.gmra.mrb[0].mxu0 %v15_v26  ;;  %296 = vmatmul.mubr.f32.vlgmr.msra.gmra.mrb[0].mxu1 %v23_v27 }
  0x25   :  { %286 = vmatprep.mubr.f32.mxu0 %v16_v28  ;;  %298 = vmatprep.mubr.f32.mxu1 %v24_v29 }
  0x28   :  { %287 = vmatmul.mubr.f32.gmra.mrb[2].mxu0 %v17_v30  ;;  %299 = vmatmul.mubr.f32.gmra.mrb[2].mxu1 %v25_v31 }
  0x29   :  { %289 = vmatprep.mubr.f32.mxu0 %v18_v32  ;;  %301 = vmatprep.mubr.f32.mxu1 %v26_v33 }
  0x2c   :  { %290 = vmatmul.mubr.f32.gmra.mrb[4].mxu0 %v19_v34  ;;  %302 = vmatmul.mubr.f32.gmra.mrb[4].mxu1 %v27_v35 }
  0x2d   :  { %292 = vmatprep.mubr.f32.mxu0 %v20_v36  ;;  %304 = vmatprep.mubr.f32.mxu1 %v28_v37 }
  0x30   :  { %293 = vmatmul.mubr.f32.gmra.mrb[6].mxu0 %v21_v38  ;;  %305 = vmatmul.mubr.f32.gmra.mrb[6].mxu1 %v29_v39 }
  0xf7   :  { %v285_v41 = vpop.f32.mrb[0].mxu0  ;;  %v297_v42 = vpop.f32.mrb[0].mxu1 }
  0xf8   :  { %v125_v43 = vadd.f32 %v285_v41, %v218_v40  ;;  %v165_v44 = vadd.f32 %v297_v42, %v218_v40  ;;  %v119_v45 = vpop.f32.mrb[1].mxu0  ;;  %v159_v46 = vpop.f32.mrb[1].mxu1 }
  0xf9   :  { %v120_v47 = vadd.f32 %v218_v40, %v119_v45  ;;  %v160_v48 = vadd.f32 %v218_v40, %v159_v46 }
  0xfa   :  { %199 = vst [vmem:[%s525_s3 + $0x8] sm:$0xff] %v125_v43  ;;  %207 = vst [vmem:[%s525_s3 + $0x48] sm:$0xff] %v165_v44 }
  0xfb   :  { %198 = vst [vmem:[%s525_s3] sm:$0xff] %v120_v47  ;;  %206 = vst [vmem:[%s525_s3 + $0x40] sm:$0xff] %v160_v48  ;;  %v288_v49 = vpop.f32.mrb[2].mxu0  ;;  %v300_v50 = vpop.f32.mrb[2].mxu1 }
  0xfc   :  { %v135_v51 = vadd.f32 %v288_v49, %v218_v40  ;;  %v175_v52 = vadd.f32 %v300_v50, %v218_v40  ;;  %v129_v53 = vpop.f32.mrb[3].mxu0  ;;  %v169_v54 = vpop.f32.mrb[3].mxu1 }
  0xfd   :  { %v130_v55 = vadd.f32 %v218_v40, %v129_v53  ;;  %v170_v56 = vadd.f32 %v218_v40, %v169_v54 }
  0xfe   :  { %201 = vst [vmem:[%s525_s3 + $0x18] sm:$0xff] %v135_v51  ;;  %209 = vst [vmem:[%s525_s3 + $0x58] sm:$0xff] %v175_v52 }
  0xff   :  { %200 = vst [vmem:[%s525_s3 + $0x10] sm:$0xff] %v130_v55  ;;  %208 = vst [vmem:[%s525_s3 + $0x50] sm:$0xff] %v170_v56  ;;  %v291_v57 = vpop.f32.mrb[4].mxu0  ;;  %v303_v58 = vpop.f32.mrb[4].mxu1 }
 0x100   :  { %v145_v59 = vadd.f32 %v291_v57, %v218_v40  ;;  %v185_v60 = vadd.f32 %v303_v58, %v218_v40  ;;  %v139_v61 = vpop.f32.mrb[5].mxu0  ;;  %v179_v62 = vpop.f32.mrb[5].mxu1 }
 0x101   :  { %v140_v63 = vadd.f32 %v218_v40, %v139_v61  ;;  %v180_v0 = vadd.f32 %v218_v40, %v179_v62 }
 0x102   :  { %203 = vst [vmem:[%s525_s3 + $0x28] sm:$0xff] %v145_v59  ;;  %211 = vst [vmem:[%s525_s3 + $0x68] sm:$0xff] %v185_v60 }
 0x103   :  { %202 = vst [vmem:[%s525_s3 + $0x20] sm:$0xff] %v140_v63  ;;  %210 = vst [vmem:[%s525_s3 + $0x60] sm:$0xff] %v180_v0  ;;  %v294_v1 = vpop.f32.mrb[6].mxu0  ;;  %v306_v2 = vpop.f32.mrb[6].mxu1 }
 0x104   :  { %v155_v3 = vadd.f32 %v294_v1, %v218_v40  ;;  %v195_v4 = vadd.f32 %v306_v2, %v218_v40  ;;  %v149_v5 = vpop.f32.mrb[7].mxu0  ;;  %v189_v6 = vpop.f32.mrb[7].mxu1 }
 0x105   :  { %v150_v7 = vadd.f32 %v218_v40, %v149_v5  ;;  %v190_v8 = vadd.f32 %v218_v40, %v189_v6 }
 0x106   :  { %205 = vst [vmem:[%s525_s3 + $0x38] sm:$0xff] %v155_v3  ;;  %213 = vst [vmem:[%s525_s3 + $0x78] sm:$0xff] %v195_v4 }
 0x107   :  { %204 = vst [vmem:[%s525_s3 + $0x30] sm:$0xff] %v150_v7  ;;  %212 = vst [vmem:[%s525_s3 + $0x70] sm:$0xff] %v190_v8 }

</bundles_post_ra>
